<compile_context>
chip_gen: v7x
topology: tpu7x:2x2x1
jax: 0.10.0
libtpu: 0.0.40
codegen_flags: <defaults>
</compile_context>

<pallas_src>
import jax
import jax.numpy as jnp
from jax.experimental import pallas as pl
from jax.experimental.pallas import tpu as pltpu


def _round_up(x, m):
    return ((x + m - 1) // m) * m


# Rough HBM-byte equivalent of one grid step's fixed overhead (~0.35 us),
# generation-averaged; only used to rank K-tile candidates.
_STEP_OVERHEAD_BYTES = 400 * 1024
# X is kept fully resident in VMEM (read from HBM once) up to this size.
_X_RESIDENT_MAX_BYTES = 4 << 20


def _chip_info():
    """Return (tensorcores sharing the grid, physical VMEM bytes per core)."""
    kind = ""
    try:
        kind = jax.devices()[0].device_kind.lower()
    except Exception:
        pass
    if "v7" in kind:
        num_tc, vmem = 2, 64 << 20            # v7x: 2 TC/chip, 64 MiB VMEM/TC
    elif any(t in kind for t in ("v5 lite", "v5e", "v6 lite", "v6e", "v6")):
        num_tc, vmem = 1, 128 << 20           # v5e / v6e: single TC, 128 MiB
    elif any(t in kind for t in ("v5p", "v5", "v4")):
        num_tc, vmem = 2, 128 << 20           # megacore generations
    else:
        num_tc, vmem = 1, 64 << 20            # unknown: conservative defaults
    try:  # prefer the exact VMEM capacity when the query is available
        info = pltpu.get_tpu_info()
        cap = int(getattr(info, "vmem_capacity_bytes", 0))
        if cap >= (16 << 20):
            vmem = cap
    except Exception:
        pass
    return num_tc, vmem


def _pick_tn(n_pad128, num_tc):
    """Lane-dense N tile: full width on 1-TC chips, even 2-way split on 2-TC."""
    if num_tc >= 2 and n_pad128 % 256 == 0:
        return n_pad128 // 2                  # exactly 2 blocks: even TC split
    return n_pad128                           # one full-width lane-dense block


def _pick_tk(k, n_pad, num_n, tk_max, itemsize):
    """K tile minimizing padded-W HBM bytes + per-grid-step fixed overhead."""
    k128 = _round_up(k, 128)
    if k128 <= tk_max:
        return k128, k128                     # single K block, minimal padding
    best = None
    for tk in range(128, tk_max + 1, 128):
        k_pad = _round_up(k, tk)
        cost = (k_pad * n_pad * itemsize
                + (k_pad // tk) * num_n * _STEP_OVERHEAD_BYTES)
        if best is None or cost < best[0]:
            best = (cost, tk, k_pad)
    return best[1], best[2]


def _vmem_bytes(tm, k_pad, tn, tk, num_k, x_resident, w_bufs,
                itemsize, out_itemsize):
    if num_k == 1:
        return (2 * tm * k_pad * itemsize     # X (double buffered)
                + 2 * k_pad * tn * itemsize   # W
                + 2 * tm * tn * out_itemsize)  # out
    x_bytes = 2 * (tm * k_pad if x_resident else tm * tk) * itemsize
    return (x_bytes
            + w_bufs * tk * tn * itemsize     # streamed W tiles
            + 2 * tm * tn * out_itemsize      # out
            + tm * tn * 4)                    # resident f32 accumulator


def _single_k_kernel(x_ref, w_ref, o_ref):
    # Whole contraction in one block: straight-line DMA + MXU, no scratch.
    o_ref[...] = jnp.dot(
        x_ref[...], w_ref[...], preferred_element_type=jnp.float32
    ).astype(o_ref.dtype)


def _make_multi_k_kernel(tk, k_axis, x_resident):
    def kernel(x_ref, w_ref, o_ref, acc_ref):
        k = pl.program_id(k_axis)

        @pl.when(k == 0)
        def _():
            acc_ref[...] = jnp.zeros_like(acc_ref)

        if x_resident:
            # X lives in VMEM in full; slice the current K chunk in-kernel so
            # it is DMA'd from HBM exactly once for the whole kernel.
            x_blk = x_ref[:, pl.ds(pl.multiple_of(k * tk, 128), tk)]
        else:
            x_blk = x_ref[...]
        acc_ref[...] += jnp.dot(
            x_blk, w_ref[...], preferred_element_type=jnp.float32
        )

        @pl.when(k == pl.num_programs(k_axis) - 1)
        def _():
            o_ref[...] = acc_ref[...].astype(o_ref.dtype)

    return kernel


def _linearized_matmul(x_pad, w_pad, *, out_dtype, tm, tn, tk,
                       x_resident, w_bufs, vmem_limit):
    """out = x_pad @ w_pad. x_pad: (M_pad, K_pad), w_pad: (K_pad, N_pad)."""
    m_pad, k_pad = x_pad.shape
    k_pad2, n_pad = w_pad.shape
    assert k_pad == k_pad2
    assert m_pad % tm == 0 and n_pad % tn == 0 and k_pad % tk == 0
    num_m, num_n, num_k = m_pad // tm, n_pad // tn, k_pad // tk

    itemsize = jnp.dtype(x_pad.dtype).itemsize
    out_itemsize = jnp.dtype(out_dtype).itemsize
    cost = pl.CostEstimate(
        flops=2 * m_pad * k_pad * n_pad,
        transcendentals=0,
        bytes_accessed=(m_pad * k_pad + num_m * k_pad * n_pad) * itemsize
        + m_pad * n_pad * out_itemsize,
    )

    def make_w_spec(index_map):
        if num_k >= 3 and w_bufs >= 3:
            try:
                return pl.BlockSpec((tk, tn), index_map,
                                    pipeline_mode=pl.Buffered(w_bufs))
            except (TypeError, AttributeError):
                pass
        return pl.BlockSpec((tk, tn), index_map)

    scratch = []
    if num_k == 1:
        kernel = _single_k_kernel
        if num_m == 1:
            grid = (num_n,)
            in_specs = [pl.BlockSpec((m_pad, k_pad), lambda j: (0, 0)),
                        pl.BlockSpec((k_pad, tn), lambda j: (0, j))]
            out_spec = pl.BlockSpec((m_pad, tn), lambda j: (0, j))
            dims = ("parallel",)
        else:
            grid = (num_m, num_n)
            in_specs = [pl.BlockSpec((tm, k_pad), lambda i, j: (i, 0)),
                        pl.BlockSpec((k_pad, tn), lambda i, j: (0, j))]
            out_spec = pl.BlockSpec((tm, tn), lambda i, j: (i, j))
            dims = ("parallel", "parallel")
    else:
        if num_m == 1:
            kernel = _make_multi_k_kernel(tk, 1, x_resident)
            grid = (num_n, num_k)
            if x_resident:
                x_spec = pl.BlockSpec((m_pad, k_pad), lambda j, k: (0, 0))
            else:
                x_spec = pl.BlockSpec((m_pad, tk), lambda j, k: (0, k))
            in_specs = [x_spec, make_w_spec(lambda j, k: (k, j))]
            out_spec = pl.BlockSpec((m_pad, tn), lambda j, k: (0, j))
            dims = ("parallel", "arbitrary")
        else:
            # Large-batch fallback: tile M too (W gets re-read per M block).
            kernel = _make_multi_k_kernel(tk, 2, False)
            grid = (num_m, num_n, num_k)
            in_specs = [pl.BlockSpec((tm, tk), lambda i, j, k: (i, k)),
                        make_w_spec(lambda i, j, k: (k, j))]
            out_spec = pl.BlockSpec((tm, tn), lambda i, j, k: (i, j))
            dims = ("parallel", "parallel", "arbitrary")
        scratch = [pltpu.VMEM((tm, tn), jnp.float32)]
        # TODO(synk): on v7x, consider pltpu.CORE_PARALLEL on the N axis if
        # plain "parallel" does not actually shard the grid across both TCs.

    return pl.pallas_call(
        kernel,
        out_shape=jax.ShapeDtypeStruct((m_pad, n_pad), out_dtype),
        grid_spec=pltpu.PrefetchScalarGridSpec(
            num_scalar_prefetch=0,
            grid=grid,
            in_specs=in_specs,
            out_specs=out_spec,
            scratch_shapes=scratch,
        ),
        compiler_params=pltpu.CompilerParams(
            dimension_semantics=dims,
            vmem_limit_bytes=int(vmem_limit),
        ),
        cost_estimate=cost,
    )(x_pad, w_pad)


class LinearizedEmbeddingsPallas:
    """JAX/Pallas counterpart of the PyTorch LinearizedEmbeddings module."""

    def __init__(self, e_word, e_pos, e_type, *, compute_dtype=jnp.bfloat16,
                 tk_max=None):
        # e_* are the embedding tables: (vocab_i, hidden). The torch module's
        # three bias-free Linears (on transposed tables) + add collapse into a
        # single matmul against the row-concatenated tables.
        self.shapes = {1: tuple(e_word.shape), 2: tuple(e_pos.shape),
                       3: tuple(e_type.shape)}
        self.input_length = sum(s[0] for s in self.shapes.values())
        hidden = e_word.shape[1]
        assert e_pos.shape[1] == hidden and e_type.shape[1] == hidden

        self.k = self.input_length
        self.n = hidden
        # NOTE: compute runs in bf16 with f32 MXU accumulation by default --
        # a deliberate bandwidth/precision trade vs. the f32 PyTorch module.
        self.compute_dtype = jnp.dtype(compute_dtype)
        self.itemsize = self.compute_dtype.itemsize

        self.num_tc, vmem_cap = _chip_info()
        # Spend VMEM freely on 128-MiB chips; stay well inside v7x's 64 MiB.
        self.vmem_limit_cap = (100 << 20) if vmem_cap >= (128 << 20) else (56 << 20)
        self.vmem_budget = int(0.75 * self.vmem_limit_cap)

        # N tiling (lane-dense); generation-aware.
        n_pad128 = _round_up(self.n, 128)
        self.tn = _pick_tn(n_pad128, self.num_tc)
        self.n_pad = _round_up(n_pad128, self.tn)

        # K tiling: big tiles / few DMAs, minimal zero-padded W traffic.
        if tk_max is None:
            tk_max = 4096 if vmem_cap < (128 << 20) else 8192
        tk_max = max(128, (int(tk_max) // 128) * 128)
        self.tk, self.k_pad = _pick_tk(
            self.k, self.n_pad, self.n_pad // self.tn, tk_max, self.itemsize)

        # Concatenate, zero-pad and cast the weight once at init.
        w = jnp.concatenate(
            [jnp.asarray(e_word), jnp.asarray(e_pos), jnp.asarray(e_type)],
            axis=0)
        w = jnp.pad(w, ((0, self.k_pad - self.k), (0, self.n_pad - self.n)))
        self.w_pad = w.astype(self.compute_dtype)

    def __call__(self, x):
        out_dtype = x.dtype
        if x.ndim > 2:
            # torch.squeeze(X) on (B, 1, ..., K); keep the batch axis even when
            # B == 1 (the PyTorch module would return shape (H,) there).
            x = x.reshape(x.shape[0], -1)
        assert x.shape[-1] == self.input_length, x.shape
        m = x.shape[0]
        out_itemsize = jnp.dtype(out_dtype).itemsize

        # Fit tiles to the per-core VMEM budget: shrink tk -> tn -> tile M.
        m_pad = _round_up(max(m, 1), 16)      # bf16 sublane packing
        tm, tn, tk = m_pad, self.tn, self.tk
        while True:
            num_k = self.k_pad // tk
            x_resident = (tm == m_pad and
                          m_pad * self.k_pad * self.itemsize
                          <= _X_RESIDENT_MAX_BYTES)
            est = _vmem_bytes(tm, self.k_pad, tn, tk, num_k, x_resident, 2,
                              self.itemsize, out_itemsize)
            if est <= self.vmem_budget:
                break
            if tk > 128 and (tk // 2) % 128 == 0 and self.k_pad % (tk // 2) == 0:
                tk //= 2
            elif tn > 128 and (tn // 2) % 128 == 0 and self.n_pad % (tn // 2) == 0:
                tn //= 2
            elif tm > 16:
                tm = max(16, _round_up(tm // 2, 16))
                m_pad = _round_up(max(m, 1), tm)
            else:
                break   # minimal tiles; rely on the vmem_limit clamp

        # Third W buffer only if there is genuine VMEM headroom left.
        w_bufs = 2
        if num_k >= 3:
            est3 = _vmem_bytes(tm, self.k_pad, tn, tk, num_k, x_resident, 3,
                               self.itemsize, out_itemsize)
            if est3 <= self.vmem_budget:
                w_bufs, est = 3, est3
        vmem_limit = min(self.vmem_limit_cap, max(32 << 20, 2 * est))

        x = jnp.pad(x, ((0, m_pad - m), (0, self.k_pad - self.k)))
        x = x.astype(self.compute_dtype)

        out = _linearized_matmul(
            x, self.w_pad, out_dtype=out_dtype, tm=tm, tn=tn, tk=tk,
            x_resident=x_resident, w_bufs=w_bufs, vmem_limit=vmem_limit)
        return out[:m, : self.n]


def _reference(x, e_word, e_pos, e_type):
    if x.ndim > 2:
        x = x.reshape(x.shape[0], -1)
    v1, v2 = e_word.shape[0], e_pos.shape[0]
    return (
        x[:, :v1] @ e_word
        + x[:, v1: v1 + v2] @ e_pos
        + x[:, v1 + v2:] @ e_type
    )


if __name__ == "__main__":
    # Small BERT-like shapes: vocab=128, max_position=64, type_vocab=64, hidden=128.
    B, V1, V2, V3, H = 8, 128, 64, 64, 128
    key = jax.random.PRNGKey(0)
    k1, k2, k3, k4, k5 = jax.random.split(key, 5)

    e_word = jax.random.normal(k1, (V1, H), dtype=jnp.float32) * 0.02
    e_pos = jax.random.normal(k2, (V2, H), dtype=jnp.float32) * 0.02
    e_type = jax.random.normal(k3, (V3, H), dtype=jnp.float32) * 0.02

    # Input: soft activations over the linearized vocabularies, with a leading
    # singleton axis that forward() squeezes away.
    x = jax.random.normal(k4, (B, 1, V1 + V2 + V3), dtype=jnp.float32)
    ref = _reference(x, e_word, e_pos, e_type)

    # Path 1: whole K in a single block -> single-K kernel (no accumulator).
    model = LinearizedEmbeddingsPallas(e_word, e_pos, e_type)
    out = jax.block_until_ready(model(x))
    assert out.shape == (B, H), out.shape
    assert jnp.allclose(out, ref, atol=3e-2, rtol=3e-2), float(
        jnp.max(jnp.abs(out - ref)))

    # Path 2: force multi-K (tk < K) -> resident-X + accumulator path.
    model2 = LinearizedEmbeddingsPallas(e_word, e_pos, e_type, tk_max=128)
    out2 = jax.block_until_ready(model2(x))
    assert jnp.allclose(out2, ref, atol=3e-2, rtol=3e-2), float(
        jnp.max(jnp.abs(out2 - ref)))

    # Path 3: B == 1 (regression test for the axis-less squeeze bug).
    out1 = jax.block_until_ready(model(x[:1]))
    assert out1.shape == (1, H), out1.shape
    assert jnp.allclose(out1, ref[:1], atol=3e-2, rtol=3e-2)

    # Path 4: larger word vocab + tiny tk to exercise num_k >= 3 (deep W
    # pipelining branch) and the resident-X in-kernel K slicing.
    V1b = 512
    e_word_b = jax.random.normal(k5, (V1b, H), dtype=jnp.float32) * 0.02
    xb = jax.random.normal(k4, (B, 1, V1b + V2 + V3), dtype=jnp.float32)
    refb = _reference(xb, e_word_b, e_pos, e_type)
    model3 = LinearizedEmbeddingsPallas(e_word_b, e_pos, e_type, tk_max=128)
    out3 = jax.block_until_ready(model3(xb))
    assert out3.shape == (B, H), out3.shape
    assert jnp.allclose(out3, refb, atol=3e-2, rtol=3e-2), float(
        jnp.max(jnp.abs(out3 - refb)))

    print("KERNEL_OK")
</pallas_src>

<mosaic_0001>
module attributes {stable_mosaic.version = 11 : i64} {
  func.func @_single_k_kernel(%arg0: i32, %arg1: memref<16x256xbf16, #tpu.memory_space<vmem>>, %arg2: memref<256x128xbf16, #tpu.memory_space<vmem>>, %arg3: memref<16x128xf32, #tpu.memory_space<vmem>>) attributes {dimension_semantics = [#tpu.dimension_semantics<parallel>], iteration_bounds = array<i64: 1>, scalar_prefetch = 0 : i64, scratch_operands = 0 : i64, tpu.core_type = #tpu.core_type<tc>, window_params = [{pipeline_mode = #tpu.pipeline_mode<synchronous>, transform_indices = @transform_0, window_bounds = array<i64: 16, 256>}, {transform_indices = @transform_1, window_bounds = array<i64: 256, 128>}, {transform_indices = @transform_2, window_bounds = array<i64: 16, 128>}]} {
    %c0 = arith.constant 0 : index
    %c0_0 = arith.constant 0 : index
    %0 = vector.load %arg1[%c0, %c0_0] : memref<16x256xbf16, #tpu.memory_space<vmem>>, vector<16x256xbf16>
    %c0_1 = arith.constant 0 : index
    %c0_2 = arith.constant 0 : index
    %1 = vector.load %arg2[%c0_1, %c0_2] : memref<256x128xbf16, #tpu.memory_space<vmem>>, vector<256x128xbf16>
    %cst = arith.constant dense<0.000000e+00> : vector<16x128xf32>
    %2 = tpu.matmul %0, %1, %cst {dimension_numbers = #tpu.dot_dimension_numbers<[1], [0], [0], [1], [0, 0, 1, 1], [], []>} : vector<16x256xbf16>, vector<256x128xbf16>, vector<16x128xf32> -> vector<16x128xf32>
    %c0_3 = arith.constant 0 : index
    %c0_4 = arith.constant 0 : index
    %3 = vector.load %arg3[%c0_3, %c0_4] : memref<16x128xf32, #tpu.memory_space<vmem>>, vector<16x128xf32>
    tpu.vector_store %arg3[%c0_3, %c0_4], %2 {strides = array<i32>} : memref<16x128xf32, #tpu.memory_space<vmem>>, vector<16x128xf32>,
    return
  }
  func.func @transform_0(%arg0: i32) -> (i32, i32) {
    %c0_i32 = arith.constant 0 : i32
    %c0_i32_0 = arith.constant 0 : i32
    %c0_i32_1 = arith.constant 0 : i32
    return %c0_i32, %c0_i32_0 : i32, i32
  }
  func.func @transform_1(%arg0: i32) -> (i32, i32) {
    %c0_i32 = arith.constant 0 : i32
    %c0_i32_0 = arith.constant 0 : i32
    return %c0_i32, %arg0 : i32, i32
  }
  func.func @transform_2(%arg0: i32) -> (i32, i32) {
    %c0_i32 = arith.constant 0 : i32
    %c0_i32_0 = arith.constant 0 : i32
    return %c0_i32, %arg0 : i32, i32
  }
}

</mosaic_0001>

<bundles_post_ra>
// kernel: tpu_custom_call.1
= control target key start
LH: loop header
LB: loop body
LE: loop exit
PB: predicated region body
PF: predicated region fallthrough
CT: control target
= control target key end

     0   :  { %7 = vsyncpa [#allocation3], 0  ;;  %s444_s0 = inlined_call_operand.hbm [shape: bf16[16,256], index: 0, kind: input, shape index: {}]   ;;  %s445_s1 = inlined_call_operand.hbm [shape: bf16[256,128], index: 1, kind: input, shape index: {}]   ;;  %s446_s2 = inlined_call_operand.hbm [shape: f32[16,128], index: 2, kind: output, shape index: {}]  }
   0x1   :  { %8 = vsyncpa [#allocation6], 0 }
   0x2   :  { %9 = vsyncpa [#allocation4], 0  ;;  %s380_s9 = smov [#allocation2]   ;;  %s308_s13 = scalar_lea.hbm %s444_s0, 256 }
   0x3   :  { %s15_s10 = sshll.u32 %s380_s9, 4  ;;  %p309_p0 = scmp.ne.s32.totalorder %s444_s0, %s308_s13  ;;  %s16_s10 = int_to_ptr.vmem [resolvable:$true] %s15_s10 }
   0x4   :  { %p312_p1 = scmp.lt.u32.totalorder %s308_s13, %s444_s0 }
   0x6   :  { %p314_p2 = pnand %p312_p1, %p309_p0 }
   0x8   :  { %317 = shalt.err (!%p314_p2)
}
   0x9   :  { %s318_s18 = scalar_lea.vmem %s16_s10, 256  ;;  %p323_p4 = scmp.lt.s32.totalorder %s16_s10, %s16_s10 }
   0xa   :  { %p319_p3 = scmp.ne.s32.totalorder %s16_s10, %s318_s18  ;;  %p324_p5 = scmp.lt.s32.totalorder %s318_s18, %s318_s18 }
   0xc   :  { %p325_p6 = por %p324_p5, %p323_p4 }
   0xe   :  { %p326_p7 = pnand %p325_p6, %p319_p3 }
  0x10   :  { %329 = shalt.err (!%p326_p7)
}
  0x11   :  { %s381_s19 = smov 128   ;;  %s382_s20 = smov 8  }
  0x12   :  { %21 = dma.hbm_to_vmem [thread:$0]  %s444_s0, 256, %s16_s10, [#allocation3], %s381_s19, %s381_s19, %s382_s20  }
  0x13   :  { %s383_s23 = smov [#allocation5]   ;;  %s330_s27 = scalar_lea.hbm %s445_s1, 2048 }
  0x14   :  { %s27_s24 = sshll.u32 %s383_s23, 4  ;;  %p331_p8 = scmp.ne.s32.totalorder %s445_s1, %s330_s27  ;;  %s28_s24 = int_to_ptr.vmem [resolvable:$true] %s27_s24 }
  0x15   :  { %p334_p9 = scmp.lt.u32.totalorder %s330_s27, %s445_s1 }
  0x17   :  { %p336_p10 = pnand %p334_p9, %p331_p8 }
  0x19   :  { %339 = shalt.err (!%p336_p10)
}
  0x1a   :  { %s340_s4 = scalar_lea.vmem %s28_s24, 2048  ;;  %p345_p12 = scmp.lt.s32.totalorder %s28_s24, %s28_s24 }
  0x1b   :  { %p341_p11 = scmp.ne.s32.totalorder %s28_s24, %s340_s4  ;;  %p346_p13 = scmp.lt.s32.totalorder %s340_s4, %s340_s4 }
  0x1d   :  { %p347_p0 = por %p346_p13, %p345_p12 }
  0x1f   :  { %p348_p1 = pnand %p347_p0, %p341_p11 }
  0x21   :  { %351 = shalt.err (!%p348_p1)
}
  0x22   :  { %s384_s0 = smov 64   ;;  %s385_s5 = smov 4  }
  0x23   :  { %33 = dma.hbm_to_vmem [thread:$0]  %s445_s1, 2048, %s28_s24, [#allocation6], %s384_s0, %s384_s0, %s385_s5  }
  0x24   :  { %374 = dma.done.wait [#allocation3], 256  }
  0x25   :  { %375 = vsyncadd [#allocation3], 4294967040 }
  0x26   :  { %376 = dma.done.wait [#allocation6], 2048  }
  0x27   :  { %377 = vsyncadd [#allocation6], 4294965248  ;;  %v289_v0 = vld [vmem:[#allocation5 + $0x40] sm:$0xff]   ;;  %v291_v2 = vld [vmem:[#allocation5 + $0x48] sm:$0xff]   ;;  %s386_s1 = smov [#allocation7]  }
  0x28   :  { %v290_v1 = vld [vmem:[#allocation5] sm:$0xff]   ;;  %260 = vmatprep.subr.bf16.mxu0 %v289_v0  ;;  %v292_v3 = vld [vmem:[#allocation5 + $0x8] sm:$0xff]   ;;  %v293_v4 = vld [vmem:[#allocation5 + $0x50] sm:$0xff]   ;;  %s229_s8 = sshll.u32 %s386_s1, 4  ;;  %s230_s8 = int_to_ptr.vmem [resolvable:$true] %s229_s8 }
  0x29   :  { %261 = vmatpush3.bf16.msra.mxu0 %v290_v1  ;;  %v294_v5 = vld [vmem:[#allocation5 + $0x10] sm:$0xff]   ;;  %v295_v6 = vld [vmem:[#allocation5 + $0x58] sm:$0xff]   ;;  %v297_v8 = vld [vmem:[#allocation5 + $0x60] sm:$0xff]   ;;  %s352_s9 = scalar_lea.vmem %s230_s8, 256  ;;  %p357_p3 = scmp.lt.s32.totalorder %s230_s8, %s230_s8 }
  0x2a   :  { %262 = vmatprep.subr.bf16.mxu0 %v291_v2  ;;  %v296_v7 = vld [vmem:[#allocation5 + $0x18] sm:$0xff]   ;;  %v298_v9 = vld [vmem:[#allocation5 + $0x20] sm:$0xff]   ;;  %v299_v10 = vld [vmem:[#allocation5 + $0x68] sm:$0xff]   ;;  %p353_p2 = scmp.ne.s32.totalorder %s230_s8, %s352_s9  ;;  %p358_p4 = scmp.lt.s32.totalorder %s352_s9, %s352_s9 }
  0x2b   :  { %v307_v11 = vld [vmem:[#allocation2 + $0x4] ss:$8 sps:$4 sm:$0xff]   ;;  %v300_v12 = vld [vmem:[#allocation5 + $0x28] sm:$0xff]   ;;  %v305_v17 = vld [vmem:[#allocation2] ss:$8 sps:$4 sm:$0xff]  }
  0x2c   :  { %213 = vmatprep.mubr.bf16.mxu0 %v307_v11  ;;  %v301_v13 = vld [vmem:[#allocation5 + $0x70] sm:$0xff]   ;;  %v303_v15 = vld [vmem:[#allocation5 + $0x78] sm:$0xff]   ;;  %p359_p5 = por %p358_p4, %p357_p3 }
  0x2d   :  { %263 = vmatpush3.bf16.msra.mxu0 %v292_v3  ;;  %v302_v14 = vld [vmem:[#allocation5 + $0x30] sm:$0xff]   ;;  %v304_v16 = vld [vmem:[#allocation5 + $0x38] sm:$0xff]  }
  0x2e   :  { %264 = vmatprep.subr.bf16.mxu0 %v293_v4  ;;  %p360_p6 = pnand %p359_p5, %p353_p2 }
  0x31   :  { %265 = vmatpush3.bf16.msra.mxu0 %v294_v5 }
  0x32   :  { %266 = vmatprep.subr.bf16.mxu0 %v295_v6 }
  0x35   :  { %267 = vmatpush3.bf16.msra.mxu0 %v296_v7 }
  0x36   :  { %268 = vmatprep.subr.bf16.mxu0 %v297_v8 }
  0x39   :  { %269 = vmatpush3.bf16.msra.mxu0 %v298_v9 }
  0x3a   :  { %270 = vmatprep.subr.bf16.mxu0 %v299_v10 }
  0x3d   :  { %271 = vmatpush3.bf16.msra.mxu0 %v300_v12 }
  0x3e   :  { %272 = vmatprep.subr.bf16.mxu0 %v301_v13 }
  0x41   :  { %273 = vmatpush3.bf16.msra.mxu0 %v302_v14 }
  0x42   :  { %274 = vmatprep.subr.bf16.mxu0 %v303_v15 }
  0x45   :  { %275 = vmatpush3.bf16.msra.mxu0 %v304_v16 }
  0x48   :  { %214 = vmatmul.mubr.bf16.vlgmr.msra.gmra.mrb[0].mxu0 %v305_v17 }
 0x11b   :  { %v276_v18 = vpop.f32.mrb[0].mxu0 }
 0x11c   :  { %v277_v19 = vpop.f32.mrb[1].mxu0 }
 0x11d   :  { %v278_v20 = vadd.f32 %v277_v19, %v276_v18  ;;  %v279_v21 = vpop.f32.mrb[2].mxu0 }
 0x11e   :  { %v280_v22 = vpop.f32.mrb[3].mxu0 }
 0x11f   :  { %222 = vst [vmem:[#allocation7] sm:$0xff] %v278_v20  ;;  %v281_v23 = vadd.f32 %v280_v22, %v279_v21 }
 0x121   :  { %223 = vst [vmem:[#allocation7 + $0x8] sm:$0xff] %v281_v23 }
 0x122   :  { %363 = shalt.err (!%p360_p6)
}
 0x123   :  { %s364_s12 = scalar_lea.hbm %s446_s2, 256 }
 0x124   :  { %p365_p7 = scmp.ne.s32.totalorder %s446_s2, %s364_s12  ;;  %p368_p8 = scmp.lt.u32.totalorder %s364_s12, %s446_s2 }
 0x126   :  { %p370_p9 = pnand %p368_p8, %p365_p7 }
 0x128   :  { %373 = shalt.err (!%p370_p9)
}
 0x129   :  { %235 = dma.vmem_to_hbm [thread:$0]  %s230_s8, 256, %s446_s2, [#allocation4], %s381_s19, %s381_s19, %s382_s20  }
 0x12a   :  { %378 = dma.done.wait [#allocation4], 256  }
 0x12b   :  { %379 = vsyncadd [#allocation4], 4294967040 }
 0x12c   :  { %239 = vsyncpa [#allocation3], 1 }
 0x12d   :  { %240 = vsyncpa [#allocation6], 1 }
 0x12e   :  { %241 = vsyncpa [#allocation4], 1 }

</bundles_post_ra>
